<compile_context>
chip_gen: v7x
topology: tpu7x:2x2x1
jax: 0.10.0
libtpu: 0.0.40
codegen_flags: <defaults>
</compile_context>

<pallas_src>
import functools

import jax
import jax.numpy as jnp
from jax.experimental import pallas as pl
from jax.experimental.pallas import tpu as pltpu

HIDDEN = 64


def _qnet_kernel(x_ref, w_ref, b_ref, o_ref):
    # x_ref: [TILE_B, S]   w_ref: [4, 64, 64]   b_ref: [4, 64]   o_ref: [TILE_B, A]
    S = x_ref.shape[1]
    A = o_ref.shape[1]

    x = x_ref[...]
    b = b_ref[...]  # [4, 64]

    # Layer 1: only the first S rows of the packed w1 slot are real.
    w1 = w_ref[0][:S, :]  # [S, 64]
    h = jnp.dot(x, w1, preferred_element_type=jnp.float32) + b[0:1, :]
    h = jnp.maximum(h, 0.0)

    h = jnp.dot(h, w_ref[1], preferred_element_type=jnp.float32) + b[1:2, :]
    h = jnp.maximum(h, 0.0)

    h = jnp.dot(h, w_ref[2], preferred_element_type=jnp.float32) + b[2:3, :]
    h = jnp.maximum(h, 0.0)

    # Layer 4: w4 was zero-padded on the output dim; keep only the first A columns.
    out = jnp.dot(h, w_ref[3], preferred_element_type=jnp.float32) + b[3:4, :]
    o_ref[...] = out[:, :A].astype(o_ref.dtype)


def pack_qnetwork_params(params):
    """One-time packing of PyTorch-layout params ([out,in] weights) into the
    kernel layout: W [4, 64, 64] (in x out, zero-padded) and B [4, 64]."""
    S = params["w1"].shape[1]
    A = params["w4"].shape[0]
    W = jnp.zeros((4, HIDDEN, HIDDEN), jnp.float32)
    W = W.at[0, :S, :].set(params["w1"].T)
    W = W.at[1].set(params["w2"].T)
    W = W.at[2].set(params["w3"].T)
    W = W.at[3, :, :A].set(params["w4"].T)
    Bb = jnp.zeros((4, HIDDEN), jnp.float32)
    Bb = Bb.at[0].set(params["b1"])
    Bb = Bb.at[1].set(params["b2"])
    Bb = Bb.at[2].set(params["b3"])
    Bb = Bb.at[3, :A].set(params["b4"])
    return {"W": W, "B": Bb, "state_size": S, "action_size": A}


def qnetwork_forward(x, packed, *, tile_b_cap=1024):
    """x: [B, state_size] float32. packed: output of pack_qnetwork_params."""
    W, Bb = packed["W"], packed["B"]
    A = packed["action_size"]
    B, S = x.shape

    # Whole batch resident when small; tile (multiple of 8 rows) when large so the
    # grid pipelines and (on v7x) shards across both TensorCores.
    TILE_B = B if B <= tile_b_cap else tile_b_cap
    grid = (pl.cdiv(B, TILE_B),)

    flops = 2 * B * (S * HIDDEN + HIDDEN * HIDDEN * 2 + HIDDEN * A)
    bytes_accessed = 4 * (B * S + 4 * HIDDEN * HIDDEN + 4 * HIDDEN + B * A)

    return pl.pallas_call(
        _qnet_kernel,
        out_shape=jax.ShapeDtypeStruct((B, A), jnp.float32),
        grid=grid,
        in_specs=[
            pl.BlockSpec((TILE_B, S), lambda i: (i, 0)),
            pl.BlockSpec((4, HIDDEN, HIDDEN), lambda i: (0, 0, 0)),
            pl.BlockSpec((4, HIDDEN), lambda i: (0, 0)),
        ],
        out_specs=pl.BlockSpec((TILE_B, A), lambda i: (i, 0)),
        compiler_params=pltpu.CompilerParams(
            dimension_semantics=("parallel",)),
        cost_estimate=pl.CostEstimate(
            flops=flops, transcendentals=0, bytes_accessed=bytes_accessed),
    )(x, W, Bb)


def init_qnetwork_params(key, state_size, action_size):
    """Deterministic init matching PyTorch nn.Linear default (uniform +-1/sqrt(fan_in))."""
    dims = [(HIDDEN, state_size), (HIDDEN, HIDDEN), (HIDDEN, HIDDEN), (action_size, HIDDEN)]
    params = {}
    for i, (out_f, in_f) in enumerate(dims, start=1):
        key, kw, kb = jax.random.split(key, 3)
        bound = 1.0 / jnp.sqrt(jnp.float32(in_f))
        params[f"w{i}"] = jax.random.uniform(
            kw, (out_f, in_f), jnp.float32, minval=-bound, maxval=bound)
        params[f"b{i}"] = jax.random.uniform(
            kb, (out_f,), jnp.float32, minval=-bound, maxval=bound)
    return params


def qnetwork_reference(x, params):
    """Pure-JAX reference of the PyTorch forward."""
    h = jnp.maximum(x @ params["w1"].T + params["b1"], 0.0)
    h = jnp.maximum(h @ params["w2"].T + params["b2"], 0.0)
    h = jnp.maximum(h @ params["w3"].T + params["b3"], 0.0)
    return h @ params["w4"].T + params["b4"]


if __name__ == "__main__":
    key = jax.random.PRNGKey(0)
    state_size, action_size, batch = 8, 4, 8

    key, kx = jax.random.split(key)
    x = jax.random.normal(kx, (batch, state_size), jnp.float32)
    params = init_qnetwork_params(key, state_size, action_size)
    packed = pack_qnetwork_params(params)  # one-time; no per-call transposes

    # Small-batch path (single grid step, whole batch resident).
    out = qnetwork_forward(x, packed)
    out = jax.block_until_ready(out)
    ref = qnetwork_reference(x, params)
    assert out.shape == (batch, action_size)
    assert jnp.allclose(out, ref, atol=1e-5, rtol=1e-5), "mismatch vs reference (small batch)"

    # Tiled path (multi-step grid incl. a partial last tile) at still-small shapes.
    key, kx2 = jax.random.split(key)
    x2 = jax.random.normal(kx2, (44, state_size), jnp.float32)
    out2 = qnetwork_forward(x2, packed, tile_b_cap=16)
    out2 = jax.block_until_ready(out2)
    ref2 = qnetwork_reference(x2, params)
    assert out2.shape == (44, action_size)
    assert jnp.allclose(out2, ref2, atol=1e-5, rtol=1e-5), "mismatch vs reference (tiled batch)"

    print("KERNEL_OK")
</pallas_src>

<mosaic_0001>
module attributes {stable_mosaic.version = 11 : i64} {
  func.func @_qnet_kernel(%arg0: i32, %arg1: memref<8x8xf32, #tpu.memory_space<vmem>>, %arg2: memref<4x64x64xf32, #tpu.memory_space<vmem>>, %arg3: memref<4x64xf32, #tpu.memory_space<vmem>>, %arg4: memref<8x4xf32, #tpu.memory_space<vmem>>) attributes {dimension_semantics = [#tpu.dimension_semantics<parallel>], iteration_bounds = array<i64: 1>, scalar_prefetch = 0 : i64, scratch_operands = 0 : i64, tpu.core_type = #tpu.core_type<tc>, window_params = [{transform_indices = @transform_0, window_bounds = array<i64: 8, 8>}, {pipeline_mode = #tpu.pipeline_mode<synchronous>, transform_indices = @transform_1, window_bounds = array<i64: 4, 64, 64>}, {pipeline_mode = #tpu.pipeline_mode<synchronous>, transform_indices = @transform_2, window_bounds = array<i64: 4, 64>}, {transform_indices = @transform_3, window_bounds = array<i64: 8, 4>}]} {
    %c0 = arith.constant 0 : index
    %c0_0 = arith.constant 0 : index
    %0 = vector.load %arg1[%c0, %c0_0] : memref<8x8xf32, #tpu.memory_space<vmem>>, vector<8x8xf32>
    %c0_1 = arith.constant 0 : index
    %c0_2 = arith.constant 0 : index
    %1 = vector.load %arg3[%c0_1, %c0_2] : memref<4x64xf32, #tpu.memory_space<vmem>>, vector<4x64xf32>
    %c0_3 = arith.constant 0 : index
    %c0_4 = arith.constant 0 : index
    %c0_5 = arith.constant 0 : index
    %2 = vector.load %arg2[%c0_3, %c0_4, %c0_5] : memref<4x64x64xf32, #tpu.memory_space<vmem>>, vector<1x64x64xf32>
    %3 = vector.shape_cast %2 : vector<1x64x64xf32> to vector<64x64xf32>
    %4 = vector.extract_strided_slice %3 {offsets = [0, 0], sizes = [8, 64], strides = [1, 1]} : vector<64x64xf32> to vector<8x64xf32>
    %cst = arith.constant dense<0.000000e+00> : vector<8x64xf32>
    %5 = tpu.matmul %0, %4, %cst {dimension_numbers = #tpu.dot_dimension_numbers<[1], [0], [0], [1], [0, 0, 1, 1], [], []>} : vector<8x8xf32>, vector<8x64xf32>, vector<8x64xf32> -> vector<8x64xf32>
    %6 = vector.extract_strided_slice %1 {offsets = [0, 0], sizes = [1, 64], strides = [1, 1]} : vector<4x64xf32> to vector<1x64xf32>
    %7 = vector.broadcast %6 : vector<1x64xf32> to vector<8x64xf32>
    %8 = arith.addf %5, %7 : vector<8x64xf32>
    %cst_6 = arith.constant 0.000000e+00 : f32
    %9 = vector.broadcast %cst_6 : f32 to vector<8x64xf32>
    %10 = arith.maximumf %8, %9 : vector<8x64xf32>
    %c1 = arith.constant 1 : index
    %c0_7 = arith.constant 0 : index
    %c0_8 = arith.constant 0 : index
    %11 = vector.load %arg2[%c1, %c0_7, %c0_8] : memref<4x64x64xf32, #tpu.memory_space<vmem>>, vector<1x64x64xf32>
    %12 = vector.shape_cast %11 : vector<1x64x64xf32> to vector<64x64xf32>
    %cst_9 = arith.constant dense<0.000000e+00> : vector<8x64xf32>
    %13 = tpu.matmul %10, %12, %cst_9 {dimension_numbers = #tpu.dot_dimension_numbers<[1], [0], [0], [1], [0, 0, 1, 1], [], []>} : vector<8x64xf32>, vector<64x64xf32>, vector<8x64xf32> -> vector<8x64xf32>
    %14 = vector.extract_strided_slice %1 {offsets = [1, 0], sizes = [1, 64], strides = [1, 1]} : vector<4x64xf32> to vector<1x64xf32>
    %15 = vector.broadcast %14 : vector<1x64xf32> to vector<8x64xf32>
    %16 = arith.addf %13, %15 : vector<8x64xf32>
    %cst_10 = arith.constant 0.000000e+00 : f32
    %17 = vector.broadcast %cst_10 : f32 to vector<8x64xf32>
    %18 = arith.maximumf %16, %17 : vector<8x64xf32>
    %c2 = arith.constant 2 : index
    %c0_11 = arith.constant 0 : index
    %c0_12 = arith.constant 0 : index
    %19 = vector.load %arg2[%c2, %c0_11, %c0_12] : memref<4x64x64xf32, #tpu.memory_space<vmem>>, vector<1x64x64xf32>
    %20 = vector.shape_cast %19 : vector<1x64x64xf32> to vector<64x64xf32>
    %cst_13 = arith.constant dense<0.000000e+00> : vector<8x64xf32>
    %21 = tpu.matmul %18, %20, %cst_13 {dimension_numbers = #tpu.dot_dimension_numbers<[1], [0], [0], [1], [0, 0, 1, 1], [], []>} : vector<8x64xf32>, vector<64x64xf32>, vector<8x64xf32> -> vector<8x64xf32>
    %22 = vector.extract_strided_slice %1 {offsets = [2, 0], sizes = [1, 64], strides = [1, 1]} : vector<4x64xf32> to vector<1x64xf32>
    %23 = vector.broadcast %22 : vector<1x64xf32> to vector<8x64xf32>
    %24 = arith.addf %21, %23 : vector<8x64xf32>
    %cst_14 = arith.constant 0.000000e+00 : f32
    %25 = vector.broadcast %cst_14 : f32 to vector<8x64xf32>
    %26 = arith.maximumf %24, %25 : vector<8x64xf32>
    %c3 = arith.constant 3 : index
    %c0_15 = arith.constant 0 : index
    %c0_16 = arith.constant 0 : index
    %27 = vector.load %arg2[%c3, %c0_15, %c0_16] : memref<4x64x64xf32, #tpu.memory_space<vmem>>, vector<1x64x64xf32>
    %28 = vector.shape_cast %27 : vector<1x64x64xf32> to vector<64x64xf32>
    %cst_17 = arith.constant dense<0.000000e+00> : vector<8x64xf32>
    %29 = tpu.matmul %26, %28, %cst_17 {dimension_numbers = #tpu.dot_dimension_numbers<[1], [0], [0], [1], [0, 0, 1, 1], [], []>} : vector<8x64xf32>, vector<64x64xf32>, vector<8x64xf32> -> vector<8x64xf32>
    %30 = vector.extract_strided_slice %1 {offsets = [3, 0], sizes = [1, 64], strides = [1, 1]} : vector<4x64xf32> to vector<1x64xf32>
    %31 = vector.broadcast %30 : vector<1x64xf32> to vector<8x64xf32>
    %32 = arith.addf %29, %31 : vector<8x64xf32>
    %33 = vector.extract_strided_slice %32 {offsets = [0, 0], sizes = [8, 4], strides = [1, 1]} : vector<8x64xf32> to vector<8x4xf32>
    %c0_18 = arith.constant 0 : index
    %c0_19 = arith.constant 0 : index
    %34 = vector.load %arg4[%c0_18, %c0_19] : memref<8x4xf32, #tpu.memory_space<vmem>>, vector<8x4xf32>
    tpu.vector_store %arg4[%c0_18, %c0_19], %33 {strides = array<i32>} : memref<8x4xf32, #tpu.memory_space<vmem>>, vector<8x4xf32>,
    return
  }
  func.func @transform_0(%arg0: i32) -> (i32, i32) {
    %c0_i32 = arith.constant 0 : i32
    %c0_i32_0 = arith.constant 0 : i32
    return %arg0, %c0_i32 : i32, i32
  }
  func.func @transform_1(%arg0: i32) -> (i32, i32, i32) {
    %c0_i32 = arith.constant 0 : i32
    %c0_i32_0 = arith.constant 0 : i32
    %c0_i32_1 = arith.constant 0 : i32
    %c0_i32_2 = arith.constant 0 : i32
    return %c0_i32, %c0_i32_0, %c0_i32_1 : i32, i32, i32
  }
  func.func @transform_2(%arg0: i32) -> (i32, i32) {
    %c0_i32 = arith.constant 0 : i32
    %c0_i32_0 = arith.constant 0 : i32
    %c0_i32_1 = arith.constant 0 : i32
    return %c0_i32, %c0_i32_0 : i32, i32
  }
  func.func @transform_3(%arg0: i32) -> (i32, i32) {
    %c0_i32 = arith.constant 0 : i32
    %c0_i32_0 = arith.constant 0 : i32
    return %arg0, %c0_i32 : i32, i32
  }
}

</mosaic_0001>

<bundles_post_ra>
// kernel: tpu_custom_call.1
= control target key start
LH: loop header
LB: loop body
LE: loop exit
PB: predicated region body
PF: predicated region fallthrough
CT: control target
= control target key end

     0   :  { %8 = vsyncpa [#allocation3], 0  ;;  %s660_s0 = inlined_call_operand.hbm [shape: f32[8,8], index: 0, kind: input, shape index: {}]   ;;  %s661_s1 = inlined_call_operand.hbm [shape: f32[4,64,64], index: 1, kind: input, shape index: {}]   ;;  %s662_s2 = inlined_call_operand.vmem [shape: f32[4,64], index: 2, kind: input, shape index: {}]   ;;  %s663_s3 = inlined_call_operand.vmem [shape: f32[8,4], index: 3, kind: output, shape index: {}]  }
   0x1   :  { %9 = vsyncpa [#allocation5], 0  ;;  %s577_s12 = smov [#allocation2]   ;;  %s578_s14 = smov [#allocation4]  }
   0x2   :  { %s16_s13 = sshll.u32 %s577_s12, 4  ;;  %s25_s15 = sshll.u32 %s578_s14, 4  ;;  %s17_s13 = int_to_ptr.vmem [resolvable:$true] %s16_s13  ;;  %s604_s15 = int_to_ptr.vmem [resolvable:$true] %s25_s15 }
   0x3   :  { %s529_s18 = scalar_lea.hbm %s660_s0, 128 }
   0x4   :  { %p530_p0 = scmp.ne.s32.totalorder %s660_s0, %s529_s18  ;;  %p533_p1 = scmp.lt.u32.totalorder %s529_s18, %s660_s0 }
   0x6   :  { %p535_p2 = pnand %p533_p1, %p530_p0 }
   0x8   :  { %538 = shalt.err (!%p535_p2)
}
   0x9   :  { %s539_s23 = scalar_lea.vmem %s17_s13, 128  ;;  %p544_p4 = scmp.lt.s32.totalorder %s17_s13, %s17_s13 }
   0xa   :  { %p540_p3 = scmp.ne.s32.totalorder %s17_s13, %s539_s23  ;;  %p545_p5 = scmp.lt.s32.totalorder %s539_s23, %s539_s23 }
   0xc   :  { %p546_p6 = por %p545_p5, %p544_p4 }
   0xe   :  { %p547_p7 = pnand %p546_p6, %p540_p3 }
  0x10   :  { %550 = shalt.err (!%p547_p7)
}
  0x11   :  { %19 = dma.hbm_to_vmem [thread:$0]  %s660_s0, 128, %s17_s13, [#allocation3]  }
  0x12   :  { %s551_s28 = scalar_lea.hbm %s661_s1, 4096 }
  0x13   :  { %p552_p8 = scmp.ne.s32.totalorder %s661_s1, %s551_s28  ;;  %p555_p9 = scmp.lt.u32.totalorder %s551_s28, %s661_s1 }
  0x15   :  { %p557_p10 = pnand %p555_p9, %p552_p8 }
  0x17   :  { %560 = shalt.err (!%p557_p10)
}
  0x18   :  { %s561_s6 = scalar_lea.vmem %s604_s15, 4096  ;;  %p566_p12 = scmp.lt.s32.totalorder %s604_s15, %s604_s15 }
  0x19   :  { %p562_p11 = scmp.ne.s32.totalorder %s604_s15, %s561_s6  ;;  %p567_p13 = scmp.lt.s32.totalorder %s561_s6, %s561_s6 }
  0x1b   :  { %p568_p0 = por %p567_p13, %p566_p12 }
  0x1d   :  { %p569_p1 = pnand %p568_p0, %p562_p11 }
  0x1f   :  { %572 = shalt.err (!%p569_p1)
}
  0x20   :  { %s579_s0 = smov 128   ;;  %s580_s7 = smov 8  }
  0x21   :  { %31 = dma.hbm_to_vmem [thread:$0]  %s661_s1, 4096, %s604_s15, [#allocation5], %s579_s0, %s579_s0, %s580_s7  }
  0x22   :  { %573 = dma.done.wait [#allocation3], 128  }
  0x23   :  { %574 = vsyncadd [#allocation3], 4294967168 }
  0x24   :  { %575 = dma.done.wait [#allocation5], 4096  }
  0x25   :  { %576 = vsyncadd [#allocation5], 4294963200  ;;  %v581_v0 = vmov 0.0   ;;  %vm582_vm0 = vmmov 0   ;;  %v583_v1 = vmov 0.0|0.0   ;;  %vm47_vm1 = vcmask 64512  }
  0x26   :  { %424 = vmatprep.subr.mxu0 %v581_v0  ;;  %426 = vmatprep.mubr.msk.f32.mxu0 %vm582_vm0, %v581_v0  ;;  %v42_v2 = vld [vmem:[#allocation4] sm:$0xff]  ;;  %v40_v3 = vld [vmem:[#allocation2] sm:$0xff]  ;;  %v124_v5 = vld [vmem:[#allocation4 + $0x48] sm:$0xff]  ;;  %v43_v25 = vlaneseq  ;;  %vm135_vm2 = vcmask 523264   ;;  %vm383_vm3 = vcmask 31744  }
  0x27   :  { %486 = vmatprep.subr.bf16.mxu1 %v583_v1  ;;  %445 = vmatprep.mubr.msk.f32.mxu1 %vm582_vm0, %v581_v0  ;;  %v123_v4 = vld [vmem:[#allocation4 + $0x40] sm:$0xff]  ;;  %v125_v6 = vld [vmem:[#allocation4 + $0x50] sm:$0xff]  ;;  %v126_v7 = vld [vmem:[#allocation4 + $0x58] sm:$0xff] }
  0x28   :  { %425 = vmatpush3.msra.mxu0 %v42_v2  ;;  %v487_v8 = vpack.c.bf16 %v124_v5, %v123_v4  ;;  %v490_v9 = vpack.c.bf16 %v126_v7, %v125_v6  ;;  %v127_v10 = vld [vmem:[#allocation4 + $0x60] sm:$0xff]  ;;  %v128_v11 = vld [vmem:[#allocation4 + $0x68] sm:$0xff]  ;;  %v129_v13 = vld [vmem:[#allocation4 + $0x70] sm:$0xff]  ;;  %v44_v26 = vshrl.u32 %v43_v25, 7 }
  0x29   :  { %427 = vmatmul.mubr.msk.f32.vlgmr.msra.gmra.mrb[0].mxu0 %vm47_vm1, %v40_v3  ;;  %498 = vmatprep.subr.bf16.mxu0 %v583_v1  ;;  %v493_v12 = vpack.c.bf16 %v128_v11, %v127_v10  ;;  %v130_v14 = vld [vmem:[#allocation4 + $0x78] sm:$0xff]  ;;  %v211_v16 = vld [vmem:[#allocation4 + $0x80] sm:$0xff]  ;;  %v212_v17 = vld [vmem:[#allocation4 + $0x88] sm:$0xff] }
  0x2a   :  { %464 = vmatprep.mubr.msk.f32.mxu0 %vm582_vm0, %v581_v0  ;;  %488 = vmatpush3.bf16.msra.mxu1 %v487_v8  ;;  %v496_v15 = vpack.c.bf16 %v130_v14, %v129_v13  ;;  %v213_v18 = vld [vmem:[#allocation4 + $0x90] sm:$0xff]  ;;  %v499_v19 = vpack.c.bf16 %v212_v17, %v211_v16  ;;  %v214_v20 = vld [vmem:[#allocation4 + $0x98] sm:$0xff]  ;;  %v215_v22 = vld [vmem:[#allocation4 + $0xa0] sm:$0xff]  ;;  %v45_v27 = vsub.s32 0, %v44_v26  ;;  %v133_v46 = vsub.s32 1, %v44_v26 }
  0x2b   :  { %489 = vmatprep.subr.bf16.mxu1 %v583_v1  ;;  %v502_v21 = vpack.c.bf16 %v214_v20, %v213_v18  ;;  %v216_v23 = vld [vmem:[#allocation4 + $0xa8] sm:$0xff]  ;;  %v41_v28 = vld [vmem:[%s662_s2] sm:$0xf]  ;;  %v218_v35 = vld [vmem:[#allocation4 + $0xb8] sm:$0xff]  ;;  %v221_v55 = vsub.s32 2, %v44_v26  ;;  %v308_v61 = vsub.s32 3, %v44_v26 }
  0x2c   :  { %500 = vmatpush3.bf16.msra.mxu0 %v499_v19  ;;  %v505_v24 = vpack.c.bf16 %v216_v23, %v215_v22  ;;  %v46_v29 = vrot.slane %v41_v28, %v45_v27  ;;  %v217_v34 = vld [vmem:[#allocation4 + $0xb0] sm:$0xff]  ;;  %v298_v37 = vld [vmem:[#allocation4 + $0xc0] sm:$0xff]  ;;  %v299_v38 = vld [vmem:[#allocation4 + $0xc8] sm:$0xff]  ;;  %v134_v47 = vrot.slane %v41_v28, %v133_v46 }
  0x2d   :  { %501 = vmatprep.subr.bf16.mxu0 %v583_v1  ;;  %v508_v36 = vpack.c.bf16 %v218_v35, %v217_v34  ;;  %v300_v39 = vld [vmem:[#allocation4 + $0xd0] sm:$0xff]  ;;  %v511_v40 = vpack.c.bf16 %v299_v38, %v298_v37  ;;  %v301_v41 = vld [vmem:[#allocation4 + $0xd8] sm:$0xff]  ;;  %v302_v43 = vld [vmem:[#allocation4 + $0xe0] sm:$0xff]  ;;  %v222_v56 = vrot.slane %v41_v28, %v221_v55  ;;  %v309_v62 = vrot.slane %v41_v28, %v308_v61 }
  0x2e   :  { %491 = vmatpush3.bf16.msra.mxu1 %v490_v9  ;;  %v514_v42 = vpack.c.bf16 %v301_v41, %v300_v39  ;;  %v303_v44 = vld [vmem:[#allocation4 + $0xe8] sm:$0xff]  ;;  %v304_v52 = vld [vmem:[#allocation4 + $0xf0] sm:$0xff]  ;;  %v305_v53 = vld [vmem:[#allocation4 + $0xf8] sm:$0xff] }
  0x2f   :  { %492 = vmatprep.subr.bf16.mxu1 %v583_v1  ;;  %v517_v45 = vpack.c.bf16 %v303_v44, %v302_v43  ;;  %v520_v54 = vpack.c.bf16 %v305_v53, %v304_v52 }
  0x30   :  { %503 = vmatpush3.bf16.msra.mxu0 %v502_v21 }
  0x31   :  { %504 = vmatprep.subr.bf16.mxu0 %v583_v1 }
  0x32   :  { %494 = vmatpush3.bf16.msra.mxu1 %v493_v12 }
  0x33   :  { %495 = vmatprep.subr.bf16.mxu1 %v583_v1 }
  0x34   :  { %506 = vmatpush3.bf16.msra.mxu0 %v505_v24 }
  0x35   :  { %507 = vmatprep.subr.bf16.mxu0 %v583_v1 }
  0x36   :  { %497 = vmatpush3.bf16.msra.mxu1 %v496_v15 }
  0x37   :  { %510 = vmatprep.subr.bf16.mxu1 %v583_v1 }
  0x38   :  { %509 = vmatpush3.bf16.msra.mxu0 %v508_v36 }
  0xfc   :  { %v117_v30 = vpop.f32.mrb[0].mxu0 }
  0xfd   :  { %v118_v31 = vadd.f32 %v117_v30, %v46_v29  ;;  %v428_v32 = vpop.f32.mrb[1].mxu0 }
  0xff   :  { %v121_v33 = vmax.f32 %v118_v31, 0.0 }
 0x101   :  { %446 = vmatmul.mubr.msk.f32.vlgmr.msra.gmra.mrb[0].mxu1 %vm135_vm2, %v121_v33 }
 0x102   :  { %483 = vmatprep.mubr.msk.f32.mxu1 %vm582_vm0, %v581_v0  ;;  %512 = vmatpush3.bf16.msra.mxu1 %v511_v40 }
 0x103   :  { %513 = vmatprep.subr.bf16.mxu1 %v583_v1 }
 0x106   :  { %515 = vmatpush3.bf16.msra.mxu1 %v514_v42 }
 0x107   :  { %516 = vmatprep.subr.bf16.mxu1 %v583_v1 }
 0x10a   :  { %518 = vmatpush3.bf16.msra.mxu1 %v517_v45 }
 0x10b   :  { %519 = vmatprep.subr.bf16.mxu1 %v583_v1 }
 0x10e   :  { %521 = vmatpush3.bf16.msra.mxu1 %v520_v54 }
 0x1d4   :  { %v205_v48 = vpop.f32.mrb[0].mxu1 }
 0x1d5   :  { %v206_v49 = vadd.f32 %v205_v48, %v134_v47  ;;  %v447_v50 = vpop.f32.mrb[1].mxu1 }
 0x1d7   :  { %v209_v51 = vmax.f32 %v206_v49, 0.0 }
 0x1d9   :  { %465 = vmatmul.mubr.msk.f32.vlgmr.msra.gmra.mrb[2].mxu0 %vm135_vm2, %v209_v51 }
 0x2ac   :  { %v292_v57 = vpop.f32.mrb[2].mxu0 }
 0x2ad   :  { %v293_v58 = vadd.f32 %v292_v57, %v222_v56  ;;  %v466_v59 = vpop.f32.mrb[3].mxu0 }
 0x2af   :  { %v296_v60 = vmax.f32 %v293_v58, 0.0 }
 0x2b1   :  { %484 = vmatmul.mubr.msk.f32.vlgmr.msra.gmra.mrb[2].mxu1 %vm135_vm2, %v296_v60 }
 0x384   :  { %v379_v63 = vpop.f32.mrb[2].mxu1 }
 0x385   :  { %v380_v0 = vadd.f32 %v379_v63, %v309_v62  ;;  %v485_v1 = vpop.f32.mrb[3].mxu1 }
 0x387   :  { %384 = vst.msk [vmem:[%s663_s3] sm:$0xff] %vm383_vm3, %v380_v0 }
 0x388   :  { %389 = vsyncpa [#allocation3], 1 }
 0x389   :  { %390 = vsyncpa [#allocation5], 1 }

</bundles_post_ra>
